<compile_context>
chip_gen: v7x
topology: tpu7x:2x2x1
jax: 0.10.0
libtpu: 0.0.40
codegen_flags: <defaults>
</compile_context>

<pallas_src>
import jax
import jax.numpy as jnp
from jax.experimental import pallas as pl
from jax.experimental.pallas import tpu as pltpu

_LANE = 128
_MAX_COLS = 2048                       # widest lane-dense slab we try
_TARGET_TILE_BYTES = 4 * 1024 * 1024   # ~4 MiB/tile; in+out double-buffered = 16 MiB
_VMEM_LIMIT_BYTES = 32 << 20           # explicit scoped-VMEM headroom (v5e default is 16 MiB)
_SMALL_BYPASS_BYTES = 256 * 1024       # below this, dispatch overhead dominates


def _copy_kernel(x_ref, o_ref):
    # Straight VMEM copy of one lane-dense tile.
    o_ref[...] = x_ref[...]


def _pick_cols(total: int) -> int:
    """Largest multiple of 128 that divides `total`, capped at _MAX_COLS."""
    for c in range(_MAX_COLS, _LANE - 1, -_LANE):
        if total % c == 0:
            return c
    return _LANE  # unreachable when total % 128 == 0


def _pallas_copy_2d(x2d: jax.Array) -> jax.Array:
    rows, cols = x2d.shape
    itemsize = jnp.dtype(x2d.dtype).itemsize
    # Packed sublane minimum: 8 for 32-bit, 16 for 16-bit, 32 for 8-bit dtypes.
    sub_min = max(8, 32 // max(itemsize, 1))

    # Target ~4 MiB per tile, rounded down to the sublane multiple.
    tile_r = max(sub_min,
                 (_TARGET_TILE_BYTES // (cols * itemsize)) // sub_min * sub_min)

    # Never let the grid collapse to a single step: cap the tile at half the
    # rows so both v7x TensorCores get work under "parallel" semantics.
    half_rows = (rows // 2) // sub_min * sub_min
    if half_rows >= sub_min:
        tile_r = min(tile_r, half_rows)
    else:
        tile_r = min(tile_r, rows)  # degenerate tiny case: full-extent block

    grid = (pl.cdiv(rows, tile_r),)
    return pl.pallas_call(
        _copy_kernel,
        out_shape=jax.ShapeDtypeStruct((rows, cols), x2d.dtype),
        grid=grid,
        in_specs=[pl.BlockSpec((tile_r, cols), lambda i: (i, 0))],
        out_specs=pl.BlockSpec((tile_r, cols), lambda i: (i, 0)),
        input_output_aliases={0: 0},
        compiler_params=pltpu.CompilerParams(
            dimension_semantics=("parallel",),
            vmem_limit_bytes=_VMEM_LIMIT_BYTES,
        ),
    )(x2d)


def pallas_squeeze(x: jax.Array, dim: int) -> jax.Array:
    """Equivalent of torch.squeeze(x, dim=dim)."""
    ndim = x.ndim
    d = dim if dim >= 0 else dim + ndim

    # torch.squeeze(x, dim) is a no-op when that axis has size != 1.
    if x.shape[d] != 1:
        return x

    out_shape = tuple(s for i, s in enumerate(x.shape) if i != d)
    total = x.size
    total_bytes = total * jnp.dtype(x.dtype).itemsize

    # Squeeze never moves bytes.  Empty / tiny / non-lane-divisible inputs get
    # the free metadata-only reshape (strictly faster than any kernel).
    if total == 0 or total % _LANE != 0 or total_bytes < _SMALL_BYPASS_BYTES:
        return jnp.squeeze(x, axis=d)

    # Lane-dense slab: widest C (multiple of 128, <= 2048) that divides total.
    cols = _pick_cols(total)
    x2d = x.reshape(total // cols, cols)  # free: contiguous layout unchanged
    y2d = _pallas_copy_2d(x2d)
    return y2d.reshape(out_shape)


class Squeeze:
    """JAX/Pallas counterpart of the PyTorch Squeeze module."""

    def __init__(self, dim: int):
        self.dim = dim

    def __call__(self, x: jax.Array) -> jax.Array:
        return pallas_squeeze(x, self.dim)


if __name__ == "__main__":
    key = jax.random.PRNGKey(0)
    k1, k2, k3, k4 = jax.random.split(key, 4)

    # Small spec-shaped input (NCHW with singleton channel) -> bypass path.
    x = jax.random.normal(k1, (2, 1, 16, 16), dtype=jnp.float32)
    mod = Squeeze(dim=1)
    y = jax.block_until_ready(mod(x))
    ref = jnp.squeeze(x, axis=1)
    assert y.shape == (2, 16, 16), y.shape
    assert y.dtype == x.dtype
    assert bool(jnp.array_equal(y, ref))

    # Negative dim indexing.
    y_neg = jax.block_until_ready(Squeeze(dim=-3)(x))
    assert bool(jnp.array_equal(y_neg, ref))

    # No-op case (dim size != 1) matches torch semantics.
    x2 = jax.random.normal(k2, (2, 4, 16, 16), dtype=jnp.float32)
    y2 = jax.block_until_ready(Squeeze(dim=1)(x2))
    assert y2.shape == x2.shape
    assert bool(jnp.array_equal(y2, x2))

    # Non-128-divisible element count -> metadata-only fallback.
    x_odd = jax.random.normal(k3, (3, 1, 5, 7), dtype=jnp.float32)
    y_odd = jax.block_until_ready(Squeeze(dim=1)(x_odd))
    assert y_odd.shape == (3, 5, 7)
    assert bool(jnp.array_equal(y_odd, jnp.squeeze(x_odd, axis=1)))

    # Medium input (512 KiB) -> exercises the Pallas copy kernel:
    # cols=2048, rows=64, tile=(32, 2048), grid=(2,), aliased in-place output.
    x_big = jax.random.normal(k4, (2, 1, 256, 256), dtype=jnp.float32)
    y_big = jax.block_until_ready(Squeeze(dim=1)(x_big))
    assert y_big.shape == (2, 256, 256), y_big.shape
    assert y_big.dtype == x_big.dtype
    assert bool(jnp.array_equal(y_big, jnp.squeeze(x_big, axis=1)))

    print("KERNEL_OK")
</pallas_src>

<mosaic_0001>
module attributes {stable_mosaic.version = 11 : i64} {
  func.func @_copy_kernel(%arg0: i32, %arg1: memref<32x2048xf32, #tpu.memory_space<vmem>>, %arg2: memref<32x2048xf32, #tpu.memory_space<vmem>>) attributes {dimension_semantics = [#tpu.dimension_semantics<parallel>], iteration_bounds = array<i64: 2>, scalar_prefetch = 0 : i64, scratch_operands = 0 : i64, tpu.core_type = #tpu.core_type<tc>, window_params = [{transform_indices = @transform_0, window_bounds = array<i64: 32, 2048>}, {transform_indices = @transform_1, window_bounds = array<i64: 32, 2048>}]} {
    %c0 = arith.constant 0 : index
    %c0_0 = arith.constant 0 : index
    %0 = vector.load %arg1[%c0, %c0_0] : memref<32x2048xf32, #tpu.memory_space<vmem>>, vector<32x2048xf32>
    %c0_1 = arith.constant 0 : index
    %c0_2 = arith.constant 0 : index
    %1 = vector.load %arg2[%c0_1, %c0_2] : memref<32x2048xf32, #tpu.memory_space<vmem>>, vector<32x2048xf32>
    tpu.vector_store %arg2[%c0_1, %c0_2], %0 {strides = array<i32>} : memref<32x2048xf32, #tpu.memory_space<vmem>>, vector<32x2048xf32>,
    return
  }
  func.func @transform_0(%arg0: i32) -> (i32, i32) {
    %c0_i32 = arith.constant 0 : i32
    %c0_i32_0 = arith.constant 0 : i32
    return %arg0, %c0_i32 : i32, i32
  }
  func.func @transform_1(%arg0: i32) -> (i32, i32) {
    %c0_i32 = arith.constant 0 : i32
    %c0_i32_0 = arith.constant 0 : i32
    return %arg0, %c0_i32 : i32, i32
  }
}

</mosaic_0001>

<bundles_post_ra>
// kernel: tpu_custom_call.1
= control target key start
LH: loop header
LB: loop body
LE: loop exit
PB: predicated region body
PF: predicated region fallthrough
CT: control target
= control target key end

     0   :  { %6 = vsyncpa [#allocation3], 0  ;;  %s833_s0 = inlined_call_operand.hbm [shape: f32[64,2048], index: 0, kind: input, shape index: {}, may-alias: {0,1}]   ;;  %s834_s1 = inlined_call_operand.hbm [shape: f32[64,2048], index: 1, kind: output, shape index: {}, may-alias: {0,1}]  }
   0x1   :  { %8 = vsyncpa [#allocation3 + $0x1], 0 }
   0x2   :  { %9 = vsyncpa [#allocation4], 0 }
   0x3   :  { %11 = vsyncpa [#allocation4 + $0x1], 0  ;;  %s538_s6 = smov 0   ;;  %s540_s7 = smov 0  }
   0x4   :  { %s542_s8 = smov 0   ;;  %s544_s9 = smov 0  }
   0x5 LB: > { %s559_s10 = sadd.s32 4294967295, %s520_s9   ;;  %s354_s11 = sadd.s32 4294967294, %s520_s9   ;;  %s520_s9 = sphi %s544_s9, %s847_s9   ;;  %s516_s8 = sphi %s542_s8, %s846_s8   ;;  %s512_s7 = sphi %s540_s7, %s845_s7   ;;  %s508_s6 = sphi %s538_s6, %s844_s6  }
   0x6   : > { %s563_s12 = sadd.s32 1, %s520_s9   ;;  %s24_s13 = sadd.s32 1, %s516_s8 }
   0x7   : > { %s21_s14 = ssub.s32 %s520_s9, %s563_s12  ;;  %p31_p0 = scmp.ne.s32.totalorder %s516_s8, %s512_s7 }
   0x8   : > { %p22_p1 = scmp.eq.s32.totalorder %s21_s14, 0  ;;  %p32_p2 = scmp.eq.s32.totalorder %s520_s9, 0 }
   0x9   : > { %p37_p3 = scmp.ne.s32.totalorder %s512_s7, %s508_s6  ;;  %p38_p4 = scmp.eq.s32.totalorder %s559_s10, 0 }
   0xa   : > { %s575_s15 = scalar_select %p22_p1, %s516_s8, %s24_s13  }
   0xb   : > { %p577_p5 = por %p32_p2, %p31_p0  ;;  %p581_p6 = por %p38_p4, %p37_p3 }
   0xc   : > { %p61_p7 = scmp.eq.s32.totalorder %s559_s10, 1  ;;  %p67_p8 = scmp.eq.s32.totalorder %s354_s11, 1 }
   0xd   : > { %p386_p10 = scmp.lt.s32.totalorder %s520_s9, 2  ;;  %s87_s20 = sand.u32 1, %s516_s8  }
   0xe   : > { %p588_p11 = por %p61_p7, %p31_p0  ;;  %p592_p12 = por %p67_p8, %p37_p3 }
   0xf   : > { %s371_s21 = sshll.u32 %s520_s9, 13  ;;  %s357_s22 = sshll.u32 %s87_s20, 9 }
  0x10   : > { %s838_s18 = scalar_select %p588_p11, 1, 0 }
  0x11   : > { %s839_s19 = scalar_select %p592_p12, 1, 0 }
  0x12   : > { %s601_s25 = scalar_lea.hbm %s833_s0, %s371_s21  ;;  %s91_s26 = scalar_lea.vmem [#allocation2], %s357_s22 }
  0x13   : > { %s99_s27 = sshll.u32 %s91_s26, 4  ;;  %p605_p13 = pnand %p386_p10, %p577_p5  ;;  %s609_s27 = int_to_ptr.vmem [resolvable:$true] %s99_s27 }
  0x14   : > { %s611_s29 = scalar_lea.sflag [#allocation3], %s87_s20  ;;  %s424_s30 = scalar_lea.hbm %s601_s25, 8192 }
  0x15   : > { %p425_p0 = scmp.ne.s32.totalorder %s601_s25, %s424_s30  ;;  %p426_p1 = pneg %p605_p13 }
  0x16   : > { %s429_s4 = scalar_lea.hbm %s833_s0, 16384  ;;  %p430_p4 = scmp.lt.u32.totalorder %s601_s25, %s833_s0 }
  0x17   : > { %p427_p2 = pnand %p426_p1, %p425_p0  ;;  %p431_p5 = scmp.lt.u32.totalorder %s429_s4, %s424_s30 }
  0x18   : > { %p433_p8 = scmp.lt.u32.totalorder %s424_s30, %s601_s25 }
  0x19   : > { %p428_p3 = pneg %p427_p2  ;;  %p432_p7 = por %p431_p5, %p430_p4 }
  0x1b   : > { %p434_p10 = por %p433_p8, %p432_p7 }
  0x1d   : > { %p435_p9 = pnand %p434_p10, %p428_p3 }
  0x1f   : > { %438 = shalt.err (!%p435_p9)
}
  0x20   : > { %s439_s13 = scalar_lea.vmem %s609_s27, 8192  ;;  %s522_s14 = smov [#allocation2]  }
  0x21   : > { %p440_p0 = scmp.ne.s32.totalorder %s609_s27, %s439_s13  ;;  %s444_s16 = sshll.u32 %s522_s14, 4  ;;  %s445_s16 = int_to_ptr.vmem [resolvable:$false] %s444_s16 }
  0x22   : > { %s446_s20 = scalar_lea.vmem %s445_s16, 16384  ;;  %p447_p11 = scmp.lt.s32.totalorder %s609_s27, %s445_s16 }
  0x23   : > { %p442_p2 = pnand %p440_p0, %p426_p1  ;;  %p448_p4 = scmp.lt.s32.totalorder %s446_s20, %s439_s13 }
  0x25   : > { %p443_p12 = pneg %p442_p2  ;;  %p449_p5 = por %p448_p4, %p447_p11 }
  0x27   : > { %p450_p7 = pnand %p449_p5, %p443_p12 }
  0x29   : > { %453 = shalt.err (!%p450_p7)
}
  0x2a   : > { %s523_s21 = smov 2048   ;;  %s524_s22 = smov 128  }
  0x2b   : > { %381 = dma.hbm_to_vmem [thread:$0]  (!%p605_p13), %s601_s25, 8192, %s609_s27, %s611_s29, %s523_s21, %s523_s21, %s524_s22  }
  0x2c   : > { %p361_p9 = scmp.ge.s32.totalorder %s520_s9, 1  ;;  %p107_p1 = scmp.lt.s32.totalorder %s520_s9, 3 }
  0x2e   : > { %p108_p3 = pnand %p361_p9, %p107_p1 }
  0x2f   : > { %s642_s23 = sand.u32 (!%p108_p3), 1, %s512_s7  }
  0x30   : > { %111 = sbr.rel (%p108_p3) target bundleno = 103 (0x67), region = 24  ;;  %s362_s24 = sshll.u32 (!%p108_p3), %s642_s23, 9 }
  0x31   : > { %s114_s26 = scalar_lea.sflag (!%p108_p3), [#allocation3], %s642_s23  ;;  %s646_s30 = scalar_lea.vmem (!%p108_p3), [#allocation2], %s362_s24 }
  0x37   : > { %499 = dma.done.wait (%p581_p6), %s114_s26, 8192  }
  0x38   : > { %501 = vsyncadd (%p581_p6), %s114_s26, 4294959104  ;;  %v138_v0 = vld [vmem:[%s646_s30] sm:$0xff]  ;;  %v139_v1 = vld [vmem:[%s646_s30 + $0x8] sm:$0xff]  ;;  %s655_s25 = scalar_lea.vmem [#allocation5], %s362_s24  ;;  %s373_s17 = sshll.u32 %s559_s10, 13 }
  0x39   : > { %v140_v2 = vld [vmem:[%s646_s30 + $0x10] sm:$0xff]  ;;  %202 = vst [vmem:[%s655_s25] sm:$0xff] %v138_v0  ;;  %203 = vst [vmem:[%s655_s25 + $0x8] sm:$0xff] %v139_v1  ;;  %v141_v3 = vld [vmem:[%s646_s30 + $0x18] sm:$0xff]  ;;  %s281_s27 = sshll.u32 %s655_s25, 4  ;;  %s776_s29 = scalar_lea.hbm %s834_s1, %s373_s17  ;;  %s778_s27 = int_to_ptr.vmem [resolvable:$true] %s281_s27 }
  0x3a   : > { %204 = vst [vmem:[%s655_s25 + $0x10] sm:$0xff] %v140_v2  ;;  %v142_v4 = vld [vmem:[%s646_s30 + $0x20] sm:$0xff]  ;;  %v143_v5 = vld [vmem:[%s646_s30 + $0x28] sm:$0xff]  ;;  %205 = vst [vmem:[%s655_s25 + $0x18] sm:$0xff] %v141_v3  ;;  %s267_s2 = scalar_lea.sflag [#allocation4], %s642_s23  ;;  %s454_s3 = scalar_lea.vmem %s778_s27, 8192 }
  0x3b   : > { %206 = vst [vmem:[%s655_s25 + $0x20] sm:$0xff] %v142_v4  ;;  %207 = vst [vmem:[%s655_s25 + $0x28] sm:$0xff] %v143_v5  ;;  %v144_v6 = vld [vmem:[%s646_s30 + $0x30] sm:$0xff]  ;;  %v145_v7 = vld [vmem:[%s646_s30 + $0x38] sm:$0xff]  ;;  %p455_p6 = scmp.ne.s32.totalorder %s778_s27, %s454_s3  ;;  %p841_p11 = scmp.ne.s32.totalorder %s838_s18, 0 }
  0x3c   : > { %v146_v8 = vld [vmem:[%s646_s30 + $0x40] sm:$0xff]  ;;  %208 = vst [vmem:[%s655_s25 + $0x30] sm:$0xff] %v144_v6  ;;  %209 = vst [vmem:[%s655_s25 + $0x38] sm:$0xff] %v145_v7  ;;  %v147_v9 = vld [vmem:[%s646_s30 + $0x48] sm:$0xff]  ;;  %s525_s4 = smov [#allocation5]  }
  0x3d   : > { %210 = vst [vmem:[%s655_s25 + $0x40] sm:$0xff] %v146_v8  ;;  %v148_v10 = vld [vmem:[%s646_s30 + $0x50] sm:$0xff]  ;;  %v149_v11 = vld [vmem:[%s646_s30 + $0x58] sm:$0xff]  ;;  %211 = vst [vmem:[%s655_s25 + $0x48] sm:$0xff] %v147_v9  ;;  %p456_p12 = pnand %p455_p6, %p841_p11  ;;  %s458_s5 = sshll.u32 %s525_s4, 4  ;;  %s459_s5 = int_to_ptr.vmem [resolvable:$false] %s458_s5 }
  0x3e   : > { %212 = vst [vmem:[%s655_s25 + $0x50] sm:$0xff] %v148_v10  ;;  %213 = vst [vmem:[%s655_s25 + $0x58] sm:$0xff] %v149_v11  ;;  %v150_v12 = vld [vmem:[%s646_s30 + $0x60] sm:$0xff]  ;;  %v151_v13 = vld [vmem:[%s646_s30 + $0x68] sm:$0xff]  ;;  %s460_s11 = scalar_lea.vmem %s459_s5, 16384  ;;  %p461_p8 = scmp.lt.s32.totalorder %s778_s27, %s459_s5 }
  0x3f   : > { %v152_v14 = vld [vmem:[%s646_s30 + $0x70] sm:$0xff]  ;;  %214 = vst [vmem:[%s655_s25 + $0x60] sm:$0xff] %v150_v12  ;;  %215 = vst [vmem:[%s655_s25 + $0x68] sm:$0xff] %v151_v13  ;;  %v153_v15 = vld [vmem:[%s646_s30 + $0x78] sm:$0xff]  ;;  %p457_p13 = pneg %p456_p12  ;;  %p462_p10 = scmp.lt.s32.totalorder %s460_s11, %s454_s3 }
  0x40   : > { %216 = vst [vmem:[%s655_s25 + $0x70] sm:$0xff] %v152_v14  ;;  %v154_v16 = vld [vmem:[%s646_s30 + $0x80] sm:$0xff]  ;;  %v155_v17 = vld [vmem:[%s646_s30 + $0x88] sm:$0xff]  ;;  %217 = vst [vmem:[%s655_s25 + $0x78] sm:$0xff] %v153_v15 }
  0x41   : > { %218 = vst [vmem:[%s655_s25 + $0x80] sm:$0xff] %v154_v16  ;;  %219 = vst [vmem:[%s655_s25 + $0x88] sm:$0xff] %v155_v17  ;;  %v156_v18 = vld [vmem:[%s646_s30 + $0x90] sm:$0xff]  ;;  %v157_v19 = vld [vmem:[%s646_s30 + $0x98] sm:$0xff]  ;;  %p463_p0 = por %p462_p10, %p461_p8 }
  0x42   : > { %v158_v20 = vld [vmem:[%s646_s30 + $0xa0] sm:$0xff]  ;;  %220 = vst [vmem:[%s655_s25 + $0x90] sm:$0xff] %v156_v18  ;;  %221 = vst [vmem:[%s655_s25 + $0x98] sm:$0xff] %v157_v19  ;;  %v159_v21 = vld [vmem:[%s646_s30 + $0xa8] sm:$0xff] }
  0x43   : > { %222 = vst [vmem:[%s655_s25 + $0xa0] sm:$0xff] %v158_v20  ;;  %v160_v22 = vld [vmem:[%s646_s30 + $0xb0] sm:$0xff]  ;;  %v161_v23 = vld [vmem:[%s646_s30 + $0xb8] sm:$0xff]  ;;  %223 = vst [vmem:[%s655_s25 + $0xa8] sm:$0xff] %v159_v21  ;;  %p464_p2 = pnand %p463_p0, %p457_p13 }
  0x44   : > { %224 = vst [vmem:[%s655_s25 + $0xb0] sm:$0xff] %v160_v22  ;;  %225 = vst [vmem:[%s655_s25 + $0xb8] sm:$0xff] %v161_v23  ;;  %v162_v24 = vld [vmem:[%s646_s30 + $0xc0] sm:$0xff]  ;;  %v163_v25 = vld [vmem:[%s646_s30 + $0xc8] sm:$0xff] }
  0x45   : > { %v164_v26 = vld [vmem:[%s646_s30 + $0xd0] sm:$0xff]  ;;  %226 = vst [vmem:[%s655_s25 + $0xc0] sm:$0xff] %v162_v24  ;;  %227 = vst [vmem:[%s655_s25 + $0xc8] sm:$0xff] %v163_v25  ;;  %v165_v27 = vld [vmem:[%s646_s30 + $0xd8] sm:$0xff] }
  0x46   : > { %228 = vst [vmem:[%s655_s25 + $0xd0] sm:$0xff] %v164_v26  ;;  %v166_v28 = vld [vmem:[%s646_s30 + $0xe0] sm:$0xff]  ;;  %v167_v29 = vld [vmem:[%s646_s30 + $0xe8] sm:$0xff]  ;;  %229 = vst [vmem:[%s655_s25 + $0xd8] sm:$0xff] %v165_v27 }
  0x47   : > { %230 = vst [vmem:[%s655_s25 + $0xe0] sm:$0xff] %v166_v28  ;;  %231 = vst [vmem:[%s655_s25 + $0xe8] sm:$0xff] %v167_v29  ;;  %v168_v30 = vld [vmem:[%s646_s30 + $0xf0] sm:$0xff]  ;;  %v169_v31 = vld [vmem:[%s646_s30 + $0xf8] sm:$0xff] }
  0x48   : > { %v170_v32 = vld [vmem:[%s646_s30 + $0x100] sm:$0xff]  ;;  %232 = vst [vmem:[%s655_s25 + $0xf0] sm:$0xff] %v168_v30  ;;  %233 = vst [vmem:[%s655_s25 + $0xf8] sm:$0xff] %v169_v31  ;;  %v171_v33 = vld [vmem:[%s646_s30 + $0x108] sm:$0xff] }
  0x49   : > { %234 = vst [vmem:[%s655_s25 + $0x100] sm:$0xff] %v170_v32  ;;  %v172_v34 = vld [vmem:[%s646_s30 + $0x110] sm:$0xff]  ;;  %v173_v35 = vld [vmem:[%s646_s30 + $0x118] sm:$0xff]  ;;  %235 = vst [vmem:[%s655_s25 + $0x108] sm:$0xff] %v171_v33 }
  0x4a   : > { %236 = vst [vmem:[%s655_s25 + $0x110] sm:$0xff] %v172_v34  ;;  %237 = vst [vmem:[%s655_s25 + $0x118] sm:$0xff] %v173_v35  ;;  %v174_v36 = vld [vmem:[%s646_s30 + $0x120] sm:$0xff]  ;;  %v175_v37 = vld [vmem:[%s646_s30 + $0x128] sm:$0xff] }
  0x4b   : > { %v176_v38 = vld [vmem:[%s646_s30 + $0x130] sm:$0xff]  ;;  %238 = vst [vmem:[%s655_s25 + $0x120] sm:$0xff] %v174_v36  ;;  %239 = vst [vmem:[%s655_s25 + $0x128] sm:$0xff] %v175_v37  ;;  %v177_v39 = vld [vmem:[%s646_s30 + $0x138] sm:$0xff] }
  0x4c   : > { %240 = vst [vmem:[%s655_s25 + $0x130] sm:$0xff] %v176_v38  ;;  %v178_v40 = vld [vmem:[%s646_s30 + $0x140] sm:$0xff]  ;;  %v179_v41 = vld [vmem:[%s646_s30 + $0x148] sm:$0xff]  ;;  %241 = vst [vmem:[%s655_s25 + $0x138] sm:$0xff] %v177_v39 }
  0x4d   : > { %242 = vst [vmem:[%s655_s25 + $0x140] sm:$0xff] %v178_v40  ;;  %243 = vst [vmem:[%s655_s25 + $0x148] sm:$0xff] %v179_v41  ;;  %v180_v42 = vld [vmem:[%s646_s30 + $0x150] sm:$0xff]  ;;  %v181_v43 = vld [vmem:[%s646_s30 + $0x158] sm:$0xff] }
  0x4e   : > { %v182_v44 = vld [vmem:[%s646_s30 + $0x160] sm:$0xff]  ;;  %244 = vst [vmem:[%s655_s25 + $0x150] sm:$0xff] %v180_v42  ;;  %245 = vst [vmem:[%s655_s25 + $0x158] sm:$0xff] %v181_v43  ;;  %v183_v45 = vld [vmem:[%s646_s30 + $0x168] sm:$0xff] }
  0x4f   : > { %246 = vst [vmem:[%s655_s25 + $0x160] sm:$0xff] %v182_v44  ;;  %v184_v46 = vld [vmem:[%s646_s30 + $0x170] sm:$0xff]  ;;  %v185_v47 = vld [vmem:[%s646_s30 + $0x178] sm:$0xff]  ;;  %247 = vst [vmem:[%s655_s25 + $0x168] sm:$0xff] %v183_v45 }
  0x50   : > { %248 = vst [vmem:[%s655_s25 + $0x170] sm:$0xff] %v184_v46  ;;  %249 = vst [vmem:[%s655_s25 + $0x178] sm:$0xff] %v185_v47  ;;  %v186_v48 = vld [vmem:[%s646_s30 + $0x180] sm:$0xff]  ;;  %v187_v49 = vld [vmem:[%s646_s30 + $0x188] sm:$0xff] }
  0x51   : > { %v188_v50 = vld [vmem:[%s646_s30 + $0x190] sm:$0xff]  ;;  %250 = vst [vmem:[%s655_s25 + $0x180] sm:$0xff] %v186_v48  ;;  %251 = vst [vmem:[%s655_s25 + $0x188] sm:$0xff] %v187_v49  ;;  %v189_v51 = vld [vmem:[%s646_s30 + $0x198] sm:$0xff] }
  0x52   : > { %252 = vst [vmem:[%s655_s25 + $0x190] sm:$0xff] %v188_v50  ;;  %v190_v52 = vld [vmem:[%s646_s30 + $0x1a0] sm:$0xff]  ;;  %v191_v53 = vld [vmem:[%s646_s30 + $0x1a8] sm:$0xff]  ;;  %253 = vst [vmem:[%s655_s25 + $0x198] sm:$0xff] %v189_v51 }
  0x53   : > { %254 = vst [vmem:[%s655_s25 + $0x1a0] sm:$0xff] %v190_v52  ;;  %255 = vst [vmem:[%s655_s25 + $0x1a8] sm:$0xff] %v191_v53  ;;  %v192_v54 = vld [vmem:[%s646_s30 + $0x1b0] sm:$0xff]  ;;  %v193_v55 = vld [vmem:[%s646_s30 + $0x1b8] sm:$0xff] }
  0x54   : > { %v194_v56 = vld [vmem:[%s646_s30 + $0x1c0] sm:$0xff]  ;;  %256 = vst [vmem:[%s655_s25 + $0x1b0] sm:$0xff] %v192_v54  ;;  %257 = vst [vmem:[%s655_s25 + $0x1b8] sm:$0xff] %v193_v55  ;;  %v195_v57 = vld [vmem:[%s646_s30 + $0x1c8] sm:$0xff] }
  0x55   : > { %258 = vst [vmem:[%s655_s25 + $0x1c0] sm:$0xff] %v194_v56  ;;  %v196_v58 = vld [vmem:[%s646_s30 + $0x1d0] sm:$0xff]  ;;  %v197_v59 = vld [vmem:[%s646_s30 + $0x1d8] sm:$0xff]  ;;  %259 = vst [vmem:[%s655_s25 + $0x1c8] sm:$0xff] %v195_v57 }
  0x56   : > { %260 = vst [vmem:[%s655_s25 + $0x1d0] sm:$0xff] %v196_v58  ;;  %261 = vst [vmem:[%s655_s25 + $0x1d8] sm:$0xff] %v197_v59  ;;  %v198_v60 = vld [vmem:[%s646_s30 + $0x1e0] sm:$0xff]  ;;  %v199_v61 = vld [vmem:[%s646_s30 + $0x1e8] sm:$0xff] }
  0x57   : > { %v200_v62 = vld [vmem:[%s646_s30 + $0x1f0] sm:$0xff]  ;;  %262 = vst [vmem:[%s655_s25 + $0x1e0] sm:$0xff] %v198_v60  ;;  %263 = vst [vmem:[%s655_s25 + $0x1e8] sm:$0xff] %v199_v61  ;;  %v201_v63 = vld [vmem:[%s646_s30 + $0x1f8] sm:$0xff] }
  0x58   : > { %264 = vst [vmem:[%s655_s25 + $0x1f0] sm:$0xff] %v200_v62  ;;  %265 = vst [vmem:[%s655_s25 + $0x1f8] sm:$0xff] %v201_v63 }
  0x59   : > { %467 = shalt.err (!%p464_p2)
}
  0x5a   : > { %s468_s13 = scalar_lea.hbm %s776_s29, 8192  ;;  %s472_s20 = scalar_lea.hbm %s834_s1, 16384 }
  0x5b   : > { %p469_p4 = scmp.ne.s32.totalorder %s776_s29, %s468_s13  ;;  %p473_p9 = scmp.lt.u32.totalorder %s776_s29, %s834_s1 }
  0x5c   : > { %p474_p1 = scmp.lt.u32.totalorder %s472_s20, %s468_s13  ;;  %p476_p6 = scmp.lt.u32.totalorder %s468_s13, %s776_s29 }
  0x5d   : > { %p470_p5 = pnand %p469_p4, %p841_p11 }
  0x5e   : > { %p475_p3 = por %p474_p1, %p473_p9 }
  0x5f   : > { %p471_p7 = pneg %p470_p5 }
  0x60   : > { %p477_p12 = por %p476_p6, %p475_p3 }
  0x62   : > { %p478_p13 = pnand %p477_p12, %p471_p7 }
  0x64   : > { %481 = shalt.err (!%p478_p13)
}
  0x65   : > { %s526_s24 = smov 2048   ;;  %s527_s26 = smov 128  }
  0x66   : > { %376 = dma.vmem_to_hbm [thread:$0]  (%p841_p11), %s778_s27, 8192, %s776_s29, %s267_s2, %s526_s24, %s526_s24, %s527_s26  }
  0x67 PF: > { %s296_s30 = sand.u32 1, %s508_s6   ;;  %p842_p8 = scmp.ne.s32.totalorder %s839_s19, 0 }
  0x68   : > { %p843_p10 = scmp.ge.s32.totalorder %s520_s9, 2  ;;  %s297_s25 = scalar_lea.sflag [#allocation4], %s296_s30 }
  0x6a   : > { %p383_p0 = pnand %p843_p10, %p842_p8 }
  0x6c   : > { %503 = dma.done.wait (!%p383_p0), %s297_s25, 8192  }
  0x6d   : > { %505 = vsyncadd (!%p383_p0), %s297_s25, 4294959104  ;;  %p14_p2 = scmp.ge.s32.totalorder %s563_s12, 4   ;;  %s844_s6 = smov %s512_s7 }
  0x6e   : > { %s845_s7 = smov %s516_s8  ;;  %s846_s8 = smov %s575_s15 }
  0x6f   : > { %s847_s9 = smov %s563_s12  ;;  %16 = sbr.rel (!%p14_p2) target bundleno = 5 (0x5), region = 69 }
  0x76   :  { %302 = vsyncpa [#allocation3], 1 }
  0x77   :  { %304 = vsyncpa [#allocation3 + $0x1], 1 }
  0x78   :  { %305 = vsyncpa [#allocation4], 1 }
  0x79   :  { %307 = vsyncpa [#allocation4 + $0x1], 1 }

</bundles_post_ra>
